<compile_context>
chip_gen: v6e
topology: v6e:2x2x1
jax: 0.10.0
libtpu: 0.0.40
codegen_flags: <defaults>
</compile_context>

<pallas_src>
import jax
import jax.numpy as jnp
from jax.experimental import pallas as pl
from jax.experimental.pallas import tpu as pltpu


def mf_kernel(bias_ref, vu_ref, vi_ref, out_ref):
    # (d_pad, tb) elementwise multiply on the VPU (f32 accumulate), sublane
    # reduce on the XLU, plus the precombined bias row -> lane-dense (1, tb)
    # output written with unmasked stores.
    vu = vu_ref[...].astype(jnp.float32)
    vi = vi_ref[...].astype(jnp.float32)
    out_ref[...] = bias_ref[...] + jnp.sum(vu * vi, axis=0, keepdims=True)


def mf_forward(u_idx, i_idx, glob_bias, user_vecs, user_bias,
               item_vecs, item_bias, *, tb=4096, use_bf16=False):
    """Pallas MF forward. Returns logodds of shape (B,), float32."""
    assert tb % 128 == 0, "tb must be a multiple of 128 (lane tile)"

    B = u_idx.shape[0]
    D = user_vecs.shape[1]

    u_idx = u_idx.astype(jnp.int32)
    i_idx = i_idx.astype(jnp.int32)

    d_pad = ((D + 7) // 8) * 8                       # sublane-aligned depth
    tb_eff = min(tb, ((B + 127) // 128) * 128)       # don't over-pad tiny batches
    b_pad = ((B + tb_eff - 1) // tb_eff) * tb_eff    # lane-tile aligned batch

    in_dtype = jnp.bfloat16 if use_bf16 else jnp.float32

    # All three bias terms combined on the XLA side: only O(B) work, and it
    # keeps the kernel a pure multiply-reduce + add.
    bias = (glob_bias[0]
            + user_bias[u_idx, 0]
            + item_bias[i_idx, 0])                                   # (B,)
    bias_slab = jnp.pad(bias, (0, b_pad - B)).reshape(1, b_pad)      # (1, b_pad) f32

    # Gather -> transpose -> pad in one expression so XLA can fuse it (and,
    # with allow_input_fusion, ideally fold it straight into the kernel input).
    # Layout: reduction over sublanes, batch on the 128-lane axis.
    vu_t = jnp.pad(
        jnp.take(user_vecs, u_idx, axis=0).T.astype(in_dtype),
        ((0, d_pad - D), (0, b_pad - B)))                            # (d_pad, b_pad)
    vi_t = jnp.pad(
        jnp.take(item_vecs, i_idx, axis=0).T.astype(in_dtype),
        ((0, d_pad - D), (0, b_pad - B)))                            # (d_pad, b_pad)

    # Only raise the scoped-VMEM limit if the tile actually needs it
    # (double-buffered inputs + bias + output).
    itemsize = 2 if use_bf16 else 4
    vmem_need = 2 * (2 * d_pad * tb_eff * itemsize) + 2 * 2 * (tb_eff * 4)
    compiler_kwargs = dict(
        dimension_semantics=("parallel",),
        allow_input_fusion=[True, True, True],
    )
    if vmem_need > 12 * 1024 * 1024:
        compiler_kwargs["vmem_limit_bytes"] = min(2 * vmem_need, 48 * 1024 * 1024)

    out = pl.pallas_call(
        mf_kernel,
        out_shape=jax.ShapeDtypeStruct((1, b_pad), jnp.float32),
        grid_spec=pl.GridSpec(
            grid=(b_pad // tb_eff,),
            in_specs=[
                pl.BlockSpec((1, tb_eff), lambda t: (0, t)),        # bias slab
                pl.BlockSpec((d_pad, tb_eff), lambda t: (0, t)),    # user vecs (D, B)
                pl.BlockSpec((d_pad, tb_eff), lambda t: (0, t)),    # item vecs (D, B)
            ],
            out_specs=pl.BlockSpec((1, tb_eff), lambda t: (0, t)),
        ),
        compiler_params=pltpu.CompilerParams(**compiler_kwargs),
    )(bias_slab, vu_t, vi_t)

    return out[0, :B]   # (B,) like PyTorch .squeeze()


if __name__ == "__main__":
    # Small, deterministic synthetic setup (mirrors MF.__init__ shapes).
    n_users, n_items, n_dim = 12, 20, 32
    B = 16

    key = jax.random.PRNGKey(0)
    k1, k2, k3, k4, k5, k6 = jax.random.split(key, 6)

    user_vecs = (0.05 * jax.random.normal(k1, (n_users, n_dim))).astype(jnp.float32)
    item_vecs = (0.05 * jax.random.normal(k2, (n_items, n_dim))).astype(jnp.float32)
    user_bias = (0.01 * jax.random.normal(k3, (n_users, 1))).astype(jnp.float32)
    item_bias = (0.01 * jax.random.normal(k4, (n_items, 1))).astype(jnp.float32)
    glob_bias = jnp.array([0.01], dtype=jnp.float32)    # Parameter([0.01])

    u_idx = jax.random.randint(k5, (B,), 0, n_users, dtype=jnp.int32)
    i_idx = jax.random.randint(k6, (B,), 0, n_items, dtype=jnp.int32)

    logodds = mf_forward(u_idx, i_idx, glob_bias,
                         user_vecs, user_bias, item_vecs, item_bias)
    jax.block_until_ready(logodds)

    # Pure-JAX reference for sanity (same math as the PyTorch forward).
    ref = (glob_bias[0]
           + user_bias[u_idx, 0]
           + item_bias[i_idx, 0]
           + jnp.sum(user_vecs[u_idx] * item_vecs[i_idx], axis=1))
    assert logodds.shape == (B,)
    assert jnp.allclose(logodds, ref, atol=1e-5, rtol=1e-5), (logodds, ref)

    print("KERNEL_OK")
</pallas_src>

<mosaic_0001>
module attributes {stable_mosaic.version = 11 : i64} {
  func.func @mf_kernel(%arg0: i32, %arg1: memref<1x128xf32, #tpu.memory_space<vmem>>, %arg2: memref<32x128xf32, #tpu.memory_space<vmem>>, %arg3: memref<32x128xf32, #tpu.memory_space<vmem>>, %arg4: memref<1x128xf32, #tpu.memory_space<vmem>>) attributes {dimension_semantics = [#tpu.dimension_semantics<parallel>], iteration_bounds = array<i64: 1>, scalar_prefetch = 0 : i64, scratch_operands = 0 : i64, tpu.core_type = #tpu.core_type<tc>, window_params = [{transform_indices = @transform_0, window_bounds = array<i64: 1, 128>}, {transform_indices = @transform_1, window_bounds = array<i64: 32, 128>}, {transform_indices = @transform_2, window_bounds = array<i64: 32, 128>}, {transform_indices = @transform_3, window_bounds = array<i64: 1, 128>}]} {
    %c0 = arith.constant 0 : index
    %c0_0 = arith.constant 0 : index
    %0 = vector.load %arg2[%c0, %c0_0] : memref<32x128xf32, #tpu.memory_space<vmem>>, vector<32x128xf32>
    %c0_1 = arith.constant 0 : index
    %c0_2 = arith.constant 0 : index
    %1 = vector.load %arg3[%c0_1, %c0_2] : memref<32x128xf32, #tpu.memory_space<vmem>>, vector<32x128xf32>
    %c0_3 = arith.constant 0 : index
    %c0_4 = arith.constant 0 : index
    %2 = vector.load %arg1[%c0_3, %c0_4] : memref<1x128xf32, #tpu.memory_space<vmem>>, vector<1x128xf32>
    %3 = arith.mulf %0, %1 : vector<32x128xf32>
    %cst = arith.constant dense<0.000000e+00> : vector<128xf32>
    %4 = vector.multi_reduction <add>, %3, %cst [0] : vector<32x128xf32> to vector<128xf32>
    %5 = vector.shape_cast %4 : vector<128xf32> to vector<1x128xf32>
    %6 = arith.addf %2, %5 : vector<1x128xf32>
    %c0_5 = arith.constant 0 : index
    %c0_6 = arith.constant 0 : index
    %7 = vector.load %arg4[%c0_5, %c0_6] : memref<1x128xf32, #tpu.memory_space<vmem>>, vector<1x128xf32>
    tpu.vector_store %arg4[%c0_5, %c0_6], %6 {strides = array<i32>} : memref<1x128xf32, #tpu.memory_space<vmem>>, vector<1x128xf32>,
    return
  }
  func.func @transform_0(%arg0: i32) -> (i32, i32) {
    %c0_i32 = arith.constant 0 : i32
    %c0_i32_0 = arith.constant 0 : i32
    return %c0_i32, %arg0 : i32, i32
  }
  func.func @transform_1(%arg0: i32) -> (i32, i32) {
    %c0_i32 = arith.constant 0 : i32
    %c0_i32_0 = arith.constant 0 : i32
    return %c0_i32, %arg0 : i32, i32
  }
  func.func @transform_2(%arg0: i32) -> (i32, i32) {
    %c0_i32 = arith.constant 0 : i32
    %c0_i32_0 = arith.constant 0 : i32
    return %c0_i32, %arg0 : i32, i32
  }
  func.func @transform_3(%arg0: i32) -> (i32, i32) {
    %c0_i32 = arith.constant 0 : i32
    %c0_i32_0 = arith.constant 0 : i32
    return %c0_i32, %arg0 : i32, i32
  }
}

</mosaic_0001>

<bundles_post_ra>
// kernel: tpu_custom_call.1
= control target key start
LH: loop header
LB: loop body
LE: loop exit
PB: predicated region body
PF: predicated region fallthrough
CT: control target
= control target key end

     0   :  { %8 = vsyncpa [#allocation3], 0  ;;  %s224_s0 = inlined_call_operand.hbm [shape: f32[1,128], index: 0, kind: input, shape index: {}]   ;;  %s225_s1 = inlined_call_operand.hbm [shape: f32[32,128], index: 1, kind: input, shape index: {}]   ;;  %s226_s2 = inlined_call_operand.hbm [shape: f32[32,128], index: 2, kind: input, shape index: {}]   ;;  %s227_s3 = inlined_call_operand.hbm [shape: f32[1,128], index: 3, kind: output, shape index: {}]  }
   0x1   :  { %9 = vsyncpa [#allocation6], 0 }
   0x2   :  { %10 = vsyncpa [#allocation4], 0  ;;  %s186_s12 = smov [#allocation5]  }
   0x3   :  { %s26_s13 = sshll.u32 %s186_s12, 4  ;;  %s27_s13 = int_to_ptr.vmem [resolvable:$true] %s26_s13 }
   0x4   :  { %s108_s14 = scalar_lea.vmem %s27_s13, 512  ;;  %p113_p1 = scmp.lt.s32.totalorder %s27_s13, %s27_s13 }
   0x5   :  { %p109_p0 = scmp.ne.s32.totalorder %s27_s13, %s108_s14  ;;  %p114_p2 = scmp.lt.s32.totalorder %s108_s14, %s108_s14 }
   0x7   :  { %p115_p3 = por %p114_p2, %p113_p1 }
   0x9   :  { %p116_p4 = pnand %p115_p3, %p109_p0 }
   0xb   :  { %119 = shalt.err (!%p116_p4)
}
   0xc   :  { %s187_s15 = smov 128   ;;  %s188_s16 = smov 8  }
   0xd   :  { %32 = dma.hbm_to_vmem [thread:$0]  %s225_s1, 512, %s27_s13, [#allocation6], %s187_s15, %s187_s15, %s188_s16  }
   0xe   :  { %s189_s19 = smov [#allocation2]   ;;  %s190_s21 = smov [#allocation7]  }
   0xf   :  { %s17_s20 = sshll.u32 %s189_s19, 4  ;;  %s38_s22 = sshll.u32 %s190_s21, 4  ;;  %s18_s20 = int_to_ptr.vmem [resolvable:$true] %s17_s20  ;;  %s39_s22 = int_to_ptr.vmem [resolvable:$true] %s38_s22 }
  0x10   :  { %s128_s23 = scalar_lea.vmem %s18_s20, 16  ;;  %s132_s24 = scalar_lea.vmem %s18_s20, 32 }
  0x11   :  { %p129_p5 = scmp.ne.s32.totalorder %s18_s20, %s128_s23  ;;  %p133_p6 = scmp.lt.s32.totalorder %s18_s20, %s18_s20 }
  0x12   :  { %p134_p7 = scmp.lt.s32.totalorder %s132_s24, %s128_s23 }
  0x14   :  { %p135_p8 = por %p134_p7, %p133_p6 }
  0x16   :  { %p136_p9 = pnand %p135_p8, %p129_p5 }
  0x18   :  { %139 = shalt.err (!%p136_p9)
}
  0x19   :  { %20 = dma.hbm_to_vmem [thread:$0]  %s224_s0, 16, %s18_s20, [#allocation3]  }
  0x1a   :  { %s148_s27 = scalar_lea.vmem %s39_s22, 512  ;;  %p153_p11 = scmp.lt.s32.totalorder %s39_s22, %s39_s22 }
  0x1b   :  { %p149_p10 = scmp.ne.s32.totalorder %s39_s22, %s148_s27  ;;  %p154_p12 = scmp.lt.s32.totalorder %s148_s27, %s148_s27 }
  0x1d   :  { %p155_p13 = por %p154_p12, %p153_p11 }
  0x1f   :  { %p156_p0 = pnand %p155_p13, %p149_p10 }
  0x21   :  { %159 = shalt.err (!%p156_p0)
}
  0x22   :  { %44 = dma.hbm_to_vmem [thread:$0]  %s226_s2, 512, %s39_s22, [#allocation6], %s187_s15, %s187_s15, %s188_s16  }
  0x23   :  { %180 = dma.done.wait [#allocation3], 16  }
  0x24   :  { %181 = vsyncadd [#allocation3], 4294967280 }
  0x25   :  { %182 = dma.done.wait [#allocation6], 1024  }
  0x26   :  { %183 = vsyncadd [#allocation6], 4294966272  ;;  %v54_v0 = vld [vmem:[#allocation5] sm:$0xff]  ;;  %v55_v1 = vld [vmem:[#allocation5 + $0x8] sm:$0xff]  ;;  %s191_s0 = smov [#allocation8]  }
  0x27   :  { %v56_v2 = vld [vmem:[#allocation5 + $0x10] sm:$0xff]  ;;  %v57_v3 = vld [vmem:[#allocation5 + $0x18] sm:$0xff]  ;;  %v58_v4 = vld [vmem:[#allocation7] sm:$0xff]  ;;  %s84_s2 = sshll.u32 %s191_s0, 4  ;;  %s85_s2 = int_to_ptr.vmem [resolvable:$true] %s84_s2 }
  0x28   :  { %v59_v5 = vld [vmem:[#allocation7 + $0x8] sm:$0xff]  ;;  %v60_v6 = vld [vmem:[#allocation7 + $0x10] sm:$0xff]  ;;  %v61_v7 = vld [vmem:[#allocation7 + $0x18] sm:$0xff]  ;;  %v63_v8 = vmul.f32 %v58_v4, %v54_v0  ;;  %s160_s29 = scalar_lea.vmem %s85_s2, 16  ;;  %s164_s30 = scalar_lea.vmem %s85_s2, 32 }
  0x29   :  { %v64_v9 = vmul.f32 %v59_v5, %v55_v1  ;;  %v65_v10 = vmul.f32 %v60_v6, %v56_v2  ;;  %v66_v11 = vmul.f32 %v61_v7, %v57_v3  ;;  %v62_v20 = vld [vmem:[#allocation2] sm:$0x1]  ;;  %p161_p1 = scmp.ne.s32.totalorder %s85_s2, %s160_s29  ;;  %p165_p2 = scmp.lt.s32.totalorder %s85_s2, %s85_s2 }
  0x2a   :  { %p166_p3 = scmp.lt.s32.totalorder %s164_s30, %s160_s29 }
  0x2b   :  { %v67_v12 = vadd.f32 %v64_v9, %v63_v8 }
  0x2c   :  { %p167_p4 = por %p166_p3, %p165_p2 }
  0x2d   :  { %v68_v13 = vadd.f32 %v67_v12, %v65_v10 }
  0x2e   :  { %p168_p5 = pnand %p167_p4, %p161_p1 }
  0x2f   :  { %v69_v14 = vadd.f32 %v68_v13, %v66_v11 }
  0x31   :  { %v70_v15 = vrot.slane %v69_v14, 4 }
  0x33   :  { %v71_v16 = vadd.f32 %v70_v15, %v69_v14 }
  0x35   :  { %v72_v17 = vrot.slane %v71_v16, 2 }
  0x37   :  { %v73_v18 = vadd.f32 %v72_v17, %v71_v16 }
  0x39   :  { %v74_v19 = vrot.slane %v73_v18, 1 }
  0x3b   :  { %v75_v21 = vadd.f32 %v74_v19, %v73_v18 }
  0x3d   :  { %v76_v22 = vadd.f32 %v75_v21, %v62_v20 }
  0x3f   :  { %77 = vst [vmem:[#allocation8] sm:$0x1] %v76_v22 }
  0x40   :  { %171 = shalt.err (!%p168_p5)
}
  0x41   :  { %87 = dma.vmem_to_hbm [thread:$0]  %s85_s2, 16, %s227_s3, [#allocation4]  }
  0x42   :  { %184 = dma.done.wait [#allocation4], 16  }
  0x43   :  { %185 = vsyncadd [#allocation4], 4294967280 }
  0x44   :  { %91 = vsyncpa [#allocation3], 1 }
  0x45   :  { %92 = vsyncpa [#allocation6], 1 }
  0x46   :  { %93 = vsyncpa [#allocation4], 1 }

</bundles_post_ra>
